<compile_context>
chip_gen: v6e
topology: v6e:2x2x1
jax: 0.10.0
libtpu: 0.0.40
codegen_flags: <defaults>
</compile_context>

<pallas_src>
import functools

import jax
import jax.numpy as jnp
import numpy as np
from jax.experimental import pallas as pl
from jax.experimental.pallas import tpu as pltpu


# ---------------------------------------------------------------------------
# Kernel 1: K/V projection, full-width matmuls, lane-dense (B, N, C) outputs
# ---------------------------------------------------------------------------
def _kv_proj_kernel(x_ref, wk_ref, wv_ref, k_ref, v_ref):
    # x_ref: (1, tn, C) f32 ; wk/wv: (C, C) bf16 ; outputs bf16 lane-dense.
    xb = x_ref[0].astype(jnp.bfloat16)
    k_ref[0] = jnp.dot(xb, wk_ref[...],
                       preferred_element_type=jnp.float32).astype(k_ref.dtype)
    v_ref[0] = jnp.dot(xb, wv_ref[...],
                       preferred_element_type=jnp.float32).astype(v_ref.dtype)


# ---------------------------------------------------------------------------
# Kernel 2: Q projection (once per q-tile) + flash attention over KV tiles
#           + fused epilogue (head-merge proj, LN1 + residual, MLP, LN2 + res)
# ---------------------------------------------------------------------------
def _attn_mlp_kernel(x_ref, wq_ref, k_ref, v_ref, wproj_ref, bc_ref,
                     w1_ref, b1_ref, w2_ref,
                     o_ref,
                     q_sc, m_sc, l_sc, acc_sc, *, num_heads, eps):
    ki = pl.program_id(2)
    H = num_heads
    tq, C = x_ref.shape[1], x_ref.shape[2]
    tk = k_ref.shape[1]
    hd = C // H

    @pl.when(ki == 0)
    def _():
        # Q projection: one full-width (tq,C)x(C,C) MXU dot (scale folded
        # into wq).  Heads are split once per q-tile and cached in VMEM.
        xb = x_ref[0].astype(jnp.bfloat16)
        q = jnp.dot(xb, wq_ref[...], preferred_element_type=jnp.float32)
        q_sc[...] = jnp.transpose(q.reshape(tq, H, hd), (1, 0, 2)
                                  ).astype(q_sc.dtype)                 # (H,tq,hd)
        m_sc[...] = jnp.full(m_sc.shape, -jnp.inf, m_sc.dtype)
        l_sc[...] = jnp.zeros(l_sc.shape, l_sc.dtype)
        acc_sc[...] = jnp.zeros(acc_sc.shape, acc_sc.dtype)

    # Split heads of the current lane-dense K/V tile (minor dim kept in place).
    k = jnp.transpose(k_ref[0].reshape(tk, H, hd), (1, 0, 2))          # (H,tk,hd) bf16
    v = jnp.transpose(v_ref[0].reshape(tk, H, hd), (1, 0, 2))          # (H,tk,hd) bf16

    # Batched-heads scores with f32 accumulation on the MXU.
    s = jnp.einsum('hqd,hkd->hqk', q_sc[...], k,
                   preferred_element_type=jnp.float32)                 # (H,tq,tk)
    m_prev = m_sc[...]
    m_new = jnp.maximum(m_prev, s.max(axis=-1, keepdims=True))         # (H,tq,1)
    alpha = jnp.exp(m_prev - m_new)
    p = jnp.exp(s - m_new)                                             # f32 (all gens)
    l_sc[...] = alpha * l_sc[...] + p.sum(axis=-1, keepdims=True)
    acc_sc[...] = alpha * acc_sc[...] + jnp.einsum(
        'hqk,hkd->hqd', p.astype(jnp.bfloat16), v,
        preferred_element_type=jnp.float32)
    m_sc[...] = m_new

    @pl.when(ki == pl.num_programs(2) - 1)
    def _():
        inv_l = pl.reciprocal(l_sc[...], approx=True)                  # EUP reciprocal
        attn = acc_sc[...] * inv_l                                     # (H,tq,hd) f32
        # Merge heads back to a lane-dense (tq, C) slab -> ONE (tq,C)x(C,C)
        # output-projection dot (no per-head accumulator loop).
        merged = jnp.transpose(attn, (1, 0, 2)).reshape(tq, C).astype(jnp.bfloat16)

        bc = bc_ref[...]                                               # (6, C) f32
        bproj, g1, beta1 = bc[0:1], bc[1:2], bc[2:3]
        b2, g2, beta2 = bc[3:4], bc[4:5], bc[5:6]

        proj = jnp.dot(merged, wproj_ref[...],
                       preferred_element_type=jnp.float32) + bproj

        def layernorm(y, g, b):                                        # f32, eps=1e-5
            mu = jnp.mean(y, axis=-1, keepdims=True)
            var = jnp.mean((y - mu) ** 2, axis=-1, keepdims=True)
            return (y - mu) * jax.lax.rsqrt(var + eps) * g + b

        x = x_ref[0]                                                   # (tq, C) f32
        x1 = x + layernorm(proj, g1, beta1)                            # residual 1

        h1 = jnp.dot(x1.astype(jnp.bfloat16), w1_ref[...],
                     preferred_element_type=jnp.float32) + b1_ref[...]
        h1 = jax.nn.gelu(h1, approximate=False)   # nn.GELU default = exact erf
        h2 = jnp.dot(h1.astype(jnp.bfloat16), w2_ref[...],
                     preferred_element_type=jnp.float32) + b2

        x2 = x1 + layernorm(h2, g2, beta2)                             # residual 2
        o_ref[0] = x2.astype(o_ref.dtype)


# ---------------------------------------------------------------------------
# Parameter prep: split QKV weight, fold attention scale into Wq, cast bf16,
# concatenate the six C-wide biases/gains into one (6, C) array.
# ---------------------------------------------------------------------------
def _prepare_params(params, num_heads):
    C = params["wproj"].shape[0]
    hd = C // num_heads
    scale = hd ** -0.5
    wqkv = params["wqkv"]                                   # (C, 3C), (in, out)
    bc = jnp.concatenate([params["bproj"], params["g1"], params["beta1"],
                          params["b2"], params["g2"], params["beta2"]],
                         axis=0).astype(jnp.float32)        # (6, C)
    return dict(
        wq=(wqkv[:, :C] * scale).astype(jnp.bfloat16),
        wk=wqkv[:, C:2 * C].astype(jnp.bfloat16),
        wv=wqkv[:, 2 * C:].astype(jnp.bfloat16),
        wproj=params["wproj"].astype(jnp.bfloat16),
        bc=bc,
        w1=params["w1"].astype(jnp.bfloat16),
        b1=params["b1"].astype(jnp.float32),
        w2=params["w2"].astype(jnp.bfloat16),
    )


def _pick_vmem_limit():
    # Generation-aware VMEM budget with headroom (v7x: cap-12MiB ~ 52 MiB;
    # v5e/v6e: 100 MiB).  Falls back to a value safe on every generation.
    try:
        cap = int(pltpu.get_tpu_info().vmem_capacity_bytes)
        return max(32 * 1024 * 1024, min(cap - 12 * 1024 * 1024, 100 * 1024 * 1024))
    except Exception:
        return 48 * 1024 * 1024


# ---------------------------------------------------------------------------
# Wrapper
# ---------------------------------------------------------------------------
def transformer_block(x, params, *, num_heads, tn=None, tq=None, tk=None,
                      vmem_limit_bytes=None, weight_buffering=True):
    B, N, C = x.shape
    assert C % num_heads == 0
    hd = C // num_heads
    hidden = params["w1"].shape[1]
    H = num_heads

    if vmem_limit_bytes is None:
        vmem_limit_bytes = _pick_vmem_limit()

    def pick(req):
        # Largest divisor of N that fits the request; fall back to full N if
        # the divisor is not sublane-aligned.  Default 256 (sweep 256/512 on
        # v6e; keep <=256 on v7x for the smaller VMEM).
        t = min(req if req is not None else 256, N)
        while N % t:
            t -= 1
        if t != N and t % 8 != 0:
            t = N
        return t

    tn, tq, tk = pick(tn), pick(tq), pick(tk)
    # v7x has 2 TensorCores: make sure the parallel grid extent is >= 2.
    if B * (N // tq) < 2 and N % 2 == 0 and (N // 2) % 8 == 0:
        tq = N // 2

    p = _prepare_params(params, num_heads)

    def invariant_spec(shape, ngrid, buffered):
        zeros = (0,) * len(shape)
        idx = (lambda b, n: zeros) if ngrid == 2 else (lambda b, qi, ki: zeros)
        if buffered:
            # Grid-invariant operand: a single buffer is enough (no re-fetch).
            return pl.BlockSpec(shape, idx, pipeline_mode=pl.Buffered(1))
        return pl.BlockSpec(shape, idx)

    # ---- kernel 1: K/V projection -> lane-dense (B, N, C) bf16 -------------
    def run_kv(buffered):
        return pl.pallas_call(
            _kv_proj_kernel,
            out_shape=[jax.ShapeDtypeStruct((B, N, C), jnp.bfloat16)] * 2,
            grid_spec=pltpu.PrefetchScalarGridSpec(
                num_scalar_prefetch=0,
                grid=(B, N // tn),
                in_specs=[pl.BlockSpec((1, tn, C), lambda b, n: (b, n, 0)),
                          invariant_spec((C, C), 2, buffered),
                          invariant_spec((C, C), 2, buffered)],
                out_specs=[pl.BlockSpec((1, tn, C), lambda b, n: (b, n, 0))] * 2,
            ),
            compiler_params=pltpu.CompilerParams(
                dimension_semantics=("parallel", "parallel"),
                vmem_limit_bytes=vmem_limit_bytes),
        )(x, p["wk"], p["wv"])

    # ---- kernel 2: Q proj + flash attention + fused proj/LN/MLP/LN ---------
    def run_block(k, v, buffered):
        inv = lambda shape: invariant_spec(shape, 3, buffered)
        in_specs = [
            pl.BlockSpec((1, tq, C), lambda b, qi, ki: (b, qi, 0)),   # x
            inv((C, C)),                                              # wq (scaled)
            pl.BlockSpec((1, tk, C), lambda b, qi, ki: (b, ki, 0)),   # k
            pl.BlockSpec((1, tk, C), lambda b, qi, ki: (b, ki, 0)),   # v
            inv((C, C)),                                              # wproj
            inv((6, C)),                                              # biases/gains
            inv((C, hidden)),                                         # w1
            inv((1, hidden)),                                         # b1
            inv((hidden, C)),                                         # w2
        ]
        return pl.pallas_call(
            functools.partial(_attn_mlp_kernel, num_heads=H, eps=1e-5),
            out_shape=jax.ShapeDtypeStruct((B, N, C), x.dtype),
            grid_spec=pltpu.PrefetchScalarGridSpec(
                num_scalar_prefetch=0,
                grid=(B, N // tq, N // tk),
                in_specs=in_specs,
                out_specs=pl.BlockSpec((1, tq, C), lambda b, qi, ki: (b, qi, 0)),
                scratch_shapes=[
                    pltpu.VMEM((H, tq, hd), jnp.bfloat16),   # cached Q (head-split)
                    pltpu.VMEM((H, tq, 1), jnp.float32),     # running max m
                    pltpu.VMEM((H, tq, 1), jnp.float32),     # running sum l
                    pltpu.VMEM((H, tq, hd), jnp.float32),    # output accumulator
                ],
            ),
            compiler_params=pltpu.CompilerParams(
                dimension_semantics=("parallel", "parallel", "arbitrary"),
                vmem_limit_bytes=vmem_limit_bytes),
        )(x, p["wq"], k, v, p["wproj"], p["bc"], p["w1"], p["b1"], p["w2"])

    try:
        if not weight_buffering:
            raise ValueError("weight buffering disabled")
        k, v = run_kv(True)
        return run_block(k, v, True)
    except Exception:
        # Fallback: identical kernels without pipeline_mode=pl.Buffered(1)
        # (for JAX versions / configs that reject it).
        k, v = run_kv(False)
        return run_block(k, v, False)


# ---------------------------------------------------------------------------
# Pure-JAX f32 reference mirroring the PyTorch forward
# ---------------------------------------------------------------------------
def reference(x, p, num_heads):
    B, N, C = x.shape
    hd = C // num_heads
    scale = hd ** -0.5
    qkv = x @ p["wqkv"]                                   # (B, N, 3C)
    qkv = qkv.reshape(B, N, 3, num_heads, hd).transpose(2, 0, 3, 1, 4)
    q, k, v = qkv[0], qkv[1], qkv[2]                      # (B, H, N, hd)
    attn = jax.nn.softmax((q * scale) @ jnp.swapaxes(k, -2, -1), axis=-1)
    o = attn @ v
    o = jnp.swapaxes(o, 1, 2).reshape(B, N, C)
    o = o @ p["wproj"] + p["bproj"][0]

    def ln(y, g, b):
        mu = y.mean(-1, keepdims=True)
        var = ((y - mu) ** 2).mean(-1, keepdims=True)
        return (y - mu) / jnp.sqrt(var + 1e-5) * g[0] + b[0]

    x1 = x + ln(o, p["g1"], p["beta1"])
    h = jax.nn.gelu(x1 @ p["w1"] + p["b1"][0], approximate=False)
    m = h @ p["w2"] + p["b2"][0]
    return x1 + ln(m, p["g2"], p["beta2"])


if __name__ == "__main__":
    B, N, C, H = 2, 16, 32, 4          # dim=32, num_heads=4 -> head_dim=8
    hidden = int(C * 0.5)              # mlp_ratio = 0.5 -> hidden = 16

    key = jax.random.PRNGKey(0)
    keys = jax.random.split(key, 12)
    init = lambda k, shape: 0.1 * jax.random.normal(k, shape, jnp.float32)

    params = dict(
        wqkv=init(keys[0], (C, 3 * C)),
        wproj=init(keys[1], (C, C)),
        bproj=init(keys[2], (1, C)),
        g1=1.0 + init(keys[3], (1, C)),
        beta1=init(keys[4], (1, C)),
        w1=init(keys[5], (C, hidden)),
        b1=init(keys[6], (1, hidden)),
        w2=init(keys[7], (hidden, C)),
        b2=init(keys[8], (1, C)),
        g2=1.0 + init(keys[9], (1, C)),
        beta2=init(keys[10], (1, C)),
    )
    x = jax.random.normal(keys[11], (B, N, C), jnp.float32)

    # tq/tk/tn = 8 so the flash KV loop and q-tiling are actually exercised.
    out = transformer_block(x, params, num_heads=H, tn=8, tq=8, tk=8)
    out = jax.block_until_ready(out)

    ref = reference(x, params, H)
    # bf16 MXU operands (f32 accumulation) vs the pure-f32 reference -> looser
    # tolerance than an all-f32 implementation.
    np.testing.assert_allclose(np.asarray(out), np.asarray(ref),
                               rtol=5e-2, atol=5e-2)
    # TODO(synk): sequence lengths that are not divisible by a sublane-aligned
    # tile (e.g. N=197) currently fall back to a full-N tile instead of masking.
    print("KERNEL_OK")
</pallas_src>

<mosaic_0001>
module attributes {stable_mosaic.version = 11 : i64} {
  func.func @_kv_proj_kernel(%arg0: i32, %arg1: i32, %arg2: memref<1x8x32xf32, #tpu.memory_space<vmem>>, %arg3: memref<32x32xbf16, #tpu.memory_space<vmem>>, %arg4: memref<32x32xbf16, #tpu.memory_space<vmem>>, %arg5: memref<1x8x32xbf16, #tpu.memory_space<vmem>>, %arg6: memref<1x8x32xbf16, #tpu.memory_space<vmem>>) attributes {dimension_semantics = [#tpu.dimension_semantics<parallel>, #tpu.dimension_semantics<parallel>], iteration_bounds = array<i64: 2, 2>, scalar_prefetch = 0 : i64, scratch_operands = 0 : i64, tpu.core_type = #tpu.core_type<tc>, window_params = [{transform_indices = @transform_0, window_bounds = array<i64: 1, 8, 32>}, {pipeline_mode = #tpu.pipeline_mode<synchronous>, transform_indices = @transform_1, window_bounds = array<i64: 32, 32>}, {pipeline_mode = #tpu.pipeline_mode<synchronous>, transform_indices = @transform_2, window_bounds = array<i64: 32, 32>}, {transform_indices = @transform_3, window_bounds = array<i64: 1, 8, 32>}, {transform_indices = @transform_4, window_bounds = array<i64: 1, 8, 32>}]} {
    %c0 = arith.constant 0 : index
    %c0_0 = arith.constant 0 : index
    %c0_1 = arith.constant 0 : index
    %0 = vector.load %arg2[%c0, %c0_0, %c0_1] : memref<1x8x32xf32, #tpu.memory_space<vmem>>, vector<1x8x32xf32>
    %1 = vector.shape_cast %0 : vector<1x8x32xf32> to vector<8x32xf32>
    %2 = arith.truncf %1 : vector<8x32xf32> to vector<8x32xbf16>
    %c0_2 = arith.constant 0 : index
    %c0_3 = arith.constant 0 : index
    %3 = vector.load %arg3[%c0_2, %c0_3] : memref<32x32xbf16, #tpu.memory_space<vmem>>, vector<32x32xbf16>
    %cst = arith.constant dense<0.000000e+00> : vector<8x32xf32>
    %4 = tpu.matmul %2, %3, %cst {dimension_numbers = #tpu.dot_dimension_numbers<[1], [0], [0], [1], [0, 0, 1, 1], [], []>} : vector<8x32xbf16>, vector<32x32xbf16>, vector<8x32xf32> -> vector<8x32xf32>
    %5 = arith.truncf %4 : vector<8x32xf32> to vector<8x32xbf16>
    %c0_4 = arith.constant 0 : index
    %c0_5 = arith.constant 0 : index
    %c0_6 = arith.constant 0 : index
    %6 = vector.load %arg5[%c0_4, %c0_5, %c0_6] : memref<1x8x32xbf16, #tpu.memory_space<vmem>>, vector<1x8x32xbf16>
    %7 = vector.shape_cast %6 : vector<1x8x32xbf16> to vector<8x32xbf16>
    %8 = vector.shape_cast %5 : vector<8x32xbf16> to vector<1x8x32xbf16>
    tpu.vector_store %arg5[%c0_4, %c0_5, %c0_6], %8 {strides = array<i32>} : memref<1x8x32xbf16, #tpu.memory_space<vmem>>, vector<1x8x32xbf16>,
    %c0_7 = arith.constant 0 : index
    %c0_8 = arith.constant 0 : index
    %9 = vector.load %arg4[%c0_7, %c0_8] : memref<32x32xbf16, #tpu.memory_space<vmem>>, vector<32x32xbf16>
    %cst_9 = arith.constant dense<0.000000e+00> : vector<8x32xf32>
    %10 = tpu.matmul %2, %9, %cst_9 {dimension_numbers = #tpu.dot_dimension_numbers<[1], [0], [0], [1], [0, 0, 1, 1], [], []>} : vector<8x32xbf16>, vector<32x32xbf16>, vector<8x32xf32> -> vector<8x32xf32>
    %11 = arith.truncf %10 : vector<8x32xf32> to vector<8x32xbf16>
    %c0_10 = arith.constant 0 : index
    %c0_11 = arith.constant 0 : index
    %c0_12 = arith.constant 0 : index
    %12 = vector.load %arg6[%c0_10, %c0_11, %c0_12] : memref<1x8x32xbf16, #tpu.memory_space<vmem>>, vector<1x8x32xbf16>
    %13 = vector.shape_cast %12 : vector<1x8x32xbf16> to vector<8x32xbf16>
    %14 = vector.shape_cast %11 : vector<8x32xbf16> to vector<1x8x32xbf16>
    tpu.vector_store %arg6[%c0_10, %c0_11, %c0_12], %14 {strides = array<i32>} : memref<1x8x32xbf16, #tpu.memory_space<vmem>>, vector<1x8x32xbf16>,
    return
  }
  func.func @transform_0(%arg0: i32, %arg1: i32) -> (i32, i32, i32) {
    %c0_i32 = arith.constant 0 : i32
    %c0_i32_0 = arith.constant 0 : i32
    return %arg0, %arg1, %c0_i32 : i32, i32, i32
  }
  func.func @transform_1(%arg0: i32, %arg1: i32) -> (i32, i32) {
    %c0_i32 = arith.constant 0 : i32
    %c0_i32_0 = arith.constant 0 : i32
    %c0_i32_1 = arith.constant 0 : i32
    return %c0_i32, %c0_i32_0 : i32, i32
  }
  func.func @transform_2(%arg0: i32, %arg1: i32) -> (i32, i32) {
    %c0_i32 = arith.constant 0 : i32
    %c0_i32_0 = arith.constant 0 : i32
    %c0_i32_1 = arith.constant 0 : i32
    return %c0_i32, %c0_i32_0 : i32, i32
  }
  func.func @transform_3(%arg0: i32, %arg1: i32) -> (i32, i32, i32) {
    %c0_i32 = arith.constant 0 : i32
    %c0_i32_0 = arith.constant 0 : i32
    return %arg0, %arg1, %c0_i32 : i32, i32, i32
  }
  func.func @transform_4(%arg0: i32, %arg1: i32) -> (i32, i32, i32) {
    %c0_i32 = arith.constant 0 : i32
    %c0_i32_0 = arith.constant 0 : i32
    return %arg0, %arg1, %c0_i32 : i32, i32, i32
  }
}

module attributes {stable_mosaic.version = 11 : i64} {
  func.func @_kv_proj_kernel(%arg0: i32, %arg1: i32, %arg2: memref<1x8x32xf32, #tpu.memory_space<vmem>>, %arg3: memref<32x32xbf16, #tpu.memory_space<vmem>>, %arg4: memref<32x32xbf16, #tpu.memory_space<vmem>>, %arg5: memref<1x8x32xbf16, #tpu.memory_space<vmem>>, %arg6: memref<1x8x32xbf16, #tpu.memory_space<vmem>>) attributes {dimension_semantics = [#tpu.dimension_semantics<parallel>, #tpu.dimension_semantics<parallel>], iteration_bounds = array<i64: 2, 2>, scalar_prefetch = 0 : i64, scratch_operands = 0 : i64, tpu.core_type = #tpu.core_type<tc>, window_params = [{transform_indices = @transform_0, window_bounds = array<i64: 1, 8, 32>}, {pipeline_mode = #tpu.pipeline_mode<synchronous>, transform_indices = @transform_1, window_bounds = array<i64: 32, 32>}, {pipeline_mode = #tpu.pipeline_mode<synchronous>, transform_indices = @transform_2, window_bounds = array<i64: 32, 32>}, {transform_indices = @transform_3, window_bounds = array<i64: 1, 8, 32>}, {transform_indices = @transform_4, window_bounds = array<i64: 1, 8, 32>}]} {
    %c0 = arith.constant 0 : index
    %c0_0 = arith.constant 0 : index
    %c0_1 = arith.constant 0 : index
    %0 = vector.load %arg2[%c0, %c0_0, %c0_1] : memref<1x8x32xf32, #tpu.memory_space<vmem>>, vector<1x8x32xf32>
    %1 = vector.shape_cast %0 : vector<1x8x32xf32> to vector<8x32xf32>
    %2 = arith.truncf %1 : vector<8x32xf32> to vector<8x32xbf16>
    %c0_2 = arith.constant 0 : index
    %c0_3 = arith.constant 0 : index
    %3 = vector.load %arg3[%c0_2, %c0_3] : memref<32x32xbf16, #tpu.memory_space<vmem>>, vector<32x32xbf16>
    %cst = arith.constant dense<0.000000e+00> : vector<8x32xf32>
    %4 = tpu.matmul %2, %3, %cst {dimension_numbers = #tpu.dot_dimension_numbers<[1], [0], [0], [1], [0, 0, 1, 1], [], []>} : vector<8x32xbf16>, vector<32x32xbf16>, vector<8x32xf32> -> vector<8x32xf32>
    %5 = arith.truncf %4 : vector<8x32xf32> to vector<8x32xbf16>
    %c0_4 = arith.constant 0 : index
    %c0_5 = arith.constant 0 : index
    %c0_6 = arith.constant 0 : index
    %6 = vector.load %arg5[%c0_4, %c0_5, %c0_6] : memref<1x8x32xbf16, #tpu.memory_space<vmem>>, vector<1x8x32xbf16>
    %7 = vector.shape_cast %6 : vector<1x8x32xbf16> to vector<8x32xbf16>
    %8 = vector.shape_cast %5 : vector<8x32xbf16> to vector<1x8x32xbf16>
    tpu.vector_store %arg5[%c0_4, %c0_5, %c0_6], %8 {strides = array<i32>} : memref<1x8x32xbf16, #tpu.memory_space<vmem>>, vector<1x8x32xbf16>,
    %c0_7 = arith.constant 0 : index
    %c0_8 = arith.constant 0 : index
    %9 = vector.load %arg4[%c0_7, %c0_8] : memref<32x32xbf16, #tpu.memory_space<vmem>>, vector<32x32xbf16>
    %cst_9 = arith.constant dense<0.000000e+00> : vector<8x32xf32>
    %10 = tpu.matmul %2, %9, %cst_9 {dimension_numbers = #tpu.dot_dimension_numbers<[1], [0], [0], [1], [0, 0, 1, 1], [], []>} : vector<8x32xbf16>, vector<32x32xbf16>, vector<8x32xf32> -> vector<8x32xf32>
    %11 = arith.truncf %10 : vector<8x32xf32> to vector<8x32xbf16>
    %c0_10 = arith.constant 0 : index
    %c0_11 = arith.constant 0 : index
    %c0_12 = arith.constant 0 : index
    %12 = vector.load %arg6[%c0_10, %c0_11, %c0_12] : memref<1x8x32xbf16, #tpu.memory_space<vmem>>, vector<1x8x32xbf16>
    %13 = vector.shape_cast %12 : vector<1x8x32xbf16> to vector<8x32xbf16>
    %14 = vector.shape_cast %11 : vector<8x32xbf16> to vector<1x8x32xbf16>
    tpu.vector_store %arg6[%c0_10, %c0_11, %c0_12], %14 {strides = array<i32>} : memref<1x8x32xbf16, #tpu.memory_space<vmem>>, vector<1x8x32xbf16>,
    return
  }
  func.func @transform_0(%arg0: i32, %arg1: i32) -> (i32, i32, i32) {
    %c0_i32 = arith.constant 0 : i32
    %c0_i32_0 = arith.constant 0 : i32
    return %arg0, %arg1, %c0_i32 : i32, i32, i32
  }
  func.func @transform_1(%arg0: i32, %arg1: i32) -> (i32, i32) {
    %c0_i32 = arith.constant 0 : i32
    %c0_i32_0 = arith.constant 0 : i32
    %c0_i32_1 = arith.constant 0 : i32
    return %c0_i32, %c0_i32_0 : i32, i32
  }
  func.func @transform_2(%arg0: i32, %arg1: i32) -> (i32, i32) {
    %c0_i32 = arith.constant 0 : i32
    %c0_i32_0 = arith.constant 0 : i32
    %c0_i32_1 = arith.constant 0 : i32
    return %c0_i32, %c0_i32_0 : i32, i32
  }
  func.func @transform_3(%arg0: i32, %arg1: i32) -> (i32, i32, i32) {
    %c0_i32 = arith.constant 0 : i32
    %c0_i32_0 = arith.constant 0 : i32
    return %arg0, %arg1, %c0_i32 : i32, i32, i32
  }
  func.func @transform_4(%arg0: i32, %arg1: i32) -> (i32, i32, i32) {
    %c0_i32 = arith.constant 0 : i32
    %c0_i32_0 = arith.constant 0 : i32
    return %arg0, %arg1, %c0_i32 : i32, i32, i32
  }
}

</mosaic_0001>

<bundles_post_ra>
// kernel: tpu_custom_call.1
= control target key start
LH: loop header
LB: loop body
LE: loop exit
PB: predicated region body
PF: predicated region fallthrough
CT: control target
= control target key end

     0   :  { %s1227_s0 = inlined_call_operand.hbm [shape: f32[2,16,32], index: 0, kind: input, shape index: {}]   ;;  %s1228_s1 = inlined_call_operand.hbm [shape: bf16[32,32], index: 1, kind: input, shape index: {}]   ;;  %s1229_s2 = inlined_call_operand.hbm [shape: bf16[32,32], index: 2, kind: input, shape index: {}]   ;;  %s1230_s3 = inlined_call_operand.hbm [shape: bf16[2,16,32], index: 3, kind: output, shape index: {0}]   ;;  %s1231_s4 = inlined_call_operand.hbm [shape: bf16[2,16,32], index: 4, kind: output, shape index: {1}]  }
   0x1   :  { %1238 = sst [smem:[#allocation18_spill]] %s1228_s1 }
   0x2   :  { %1239 = sst [smem:[#allocation19_spill]] %s1229_s2 }
   0x3   :  { %1240 = sst [smem:[#allocation20_spill]] %s1231_s4 }
   0x4   :  { %10 = vsyncpa [#allocation3], 0 }
   0x5   :  { %12 = vsyncpa [#allocation3 + $0x1], 0 }
   0x6   :  { %13 = vsyncpa [#allocation6], 0 }
   0x7   :  { %14 = vsyncpa [#allocation4], 0 }
   0x8   :  { %16 = vsyncpa [#allocation4 + $0x1], 0 }
   0x9   :  { %17 = vsyncpa [#allocation10], 0 }
   0xa   :  { %19 = vsyncpa [#allocation10 + $0x1], 0  ;;  %s980_s15 = smov 0   ;;  %s982_s16 = smov 0  }
   0xb   :  { %s984_s17 = smov 0   ;;  %s986_s18 = smov 0  }
   0xc   :  { %s988_s19 = smov 0   ;;  %s990_s20 = smov 0  }
   0xd   :  { %s992_s21 = smov 0   ;;  %s994_s22 = smov 0  }
   0xe LB: > { %1241 = sst [smem:[#allocation15_spill]] %s916_s15  ;;  %s571_s23 = sadd.s32 4294967295, %s944_s22   ;;  %s944_s22 = sphi %s994_s22, %s25_s22   ;;  %s940_s21 = sphi %s992_s21, %s1266_s21   ;;  %s936_s20 = sphi %s990_s20, %s1265_s20   ;;  %s932_s19 = sphi %s988_s19, %s1264_s19   ;;  %s928_s18 = sphi %s986_s18, %s1263_s18   ;;  %s924_s17 = sphi %s984_s17, %s1262_s17   ;;  %s920_s16 = sphi %s982_s16, %s1261_s16   ;;  %s916_s15 = sphi %s980_s15, %s1260_s15  }
   0xf   : > { %s572_s24 = sadd.s32 4294967294, %s944_s22   ;;  %p59_p0 = scmp.ne.s32.totalorder %s920_s16, %s916_s15 }
  0x10   : > { %p1026_p1 = scmp.eq.s32.totalorder %s571_s23, 0  ;;  %p133_p2 = scmp.eq.s32.totalorder %s572_s24, 3 }
  0x11   : > { %p573_p4 = scmp.ge.s32.totalorder %s944_s22, 1  ;;  %p168_p6 = scmp.lt.s32.totalorder %s944_s22, 5 }
  0x12   : > { %s1242_s25 = scalar_select %p1026_p1, 1, 0 }
  0x13   : > { %p1032_p3 = por %p1026_p1, %p59_p0  ;;  %p1037_p5 = por %p133_p2, %p59_p0 }
  0x14   : > { %p1042_p7 = pnand %p573_p4, %p168_p6  ;;  %s946_s29 = smov [#allocation5]  }
  0x15   : > { %s1244_s27 = scalar_select %p1037_p5, 1, 0 }
  0x16   : > { %s180_s30 = sshll.u32 %s946_s29, 4  ;;  %p636_p8 = pneg %p1042_p7  ;;  %s181_s30 = int_to_ptr.vmem [resolvable:$true] %s180_s30 }
  0x17   : > { %1245 = sst [smem:[#allocation16_spill]] %s1244_s27  ;;  %s947_s6 = smov [#allocation7]  }
  0x18   : > { %p1050_p9 = pnand %p636_p8, %p1026_p1  ;;  %s193_s7 = sshll.u32 %s947_s6, 4  ;;  %s194_s7 = int_to_ptr.vmem [resolvable:$true] %s193_s7 }
  0x19   : > { %s745_s8 = scalar_lea.vmem %s181_s30, 256  ;;  %p753_p0 = scmp.lt.s32.totalorder %s181_s30, %s181_s30 }
  0x1a   : > { %p736_p10 = pneg %p1050_p9  ;;  %p746_p11 = scmp.ne.s32.totalorder %s181_s30, %s745_s8 }
  0x1b   : > { %p754_p2 = scmp.lt.s32.totalorder %s745_s8, %s745_s8 }
  0x1c   : > { %p748_p12 = pnand %p746_p11, %p736_p10 }
  0x1d   : > { %p755_p4 = por %p754_p2, %p753_p0 }
  0x1e   : > { %p749_p13 = pneg %p748_p12 }
  0x20   : > { %p756_p6 = pnand %p755_p4, %p749_p13 }
  0x22   : > { %759 = shalt.err (!%p756_p6)
}
  0x23   : > { %s948_s9 = smov 64   ;;  %s949_s10 = smov 4  }
  0x24   : > { %s1248_s1 = sld [smem:[#allocation18_spill]]  ;;  %s771_s13 = scalar_lea.vmem %s194_s7, 256 }
  0x25   : > { %p772_p8 = scmp.ne.s32.totalorder %s194_s7, %s771_s13  ;;  %p779_p5 = scmp.lt.s32.totalorder %s194_s7, %s194_s7 }
  0x26   : > { %p780_p1 = scmp.lt.s32.totalorder %s771_s13, %s771_s13 }
  0x27   : > { %p774_p11 = pnand %p772_p8, %p736_p10 }
  0x28   : > { %p781_p0 = por %p780_p1, %p779_p5 }
  0x29   : > { %p775_p12 = pneg %p774_p11 }
  0x2a   : > { %639 = dma.hbm_to_vmem [thread:$0]  (!%p1050_p9), %s1248_s1, 256, %s181_s30, [#allocation6], %s948_s9, %s948_s9, %s949_s10  }
  0x2b   : > { %p782_p13 = pnand %p781_p0, %p775_p12 }
  0x2d   : > { %785 = shalt.err (!%p782_p13)
}
  0x2e   : > { %s1249_s2 = sld [smem:[#allocation19_spill]]  ;;  %p127_p1 = scmp.eq.s32.totalorder %s571_s23, 3 }
  0x2f   : > { %s34_s29 = sadd.s32 1, %s936_s20  ;;  %s37_s30 = sadd.s32 1, %s940_s21 }
  0x30   : > { %p35_p5 = scmp.ge.s32.totalorder %s34_s29, 2  ;;  %p53_p10 = scmp.ne.s32.totalorder %s924_s17, %s920_s16 }
  0x31   : > { %p54_p2 = scmp.eq.s32.totalorder %s944_s22, 0  ;;  %s46_s6 = sadd.s32 1, %s924_s17 }
  0x32   : > { %s1268_s29 = smov (%p35_p5, %s34_s29), 0  ;;  %s1270_s30 = smov (!%p35_p5, %s37_s30), %s940_s21 }
  0x33   : > { %1250 = sst [smem:[#allocation17_spill]] %s1268_s29  ;;  %s42_s5 = ssub.s32 %s936_s20, %s1268_s29 }
  0x34   : > { %642 = dma.hbm_to_vmem [thread:$0]  (!%p1050_p9), %s1249_s2, 256, %s194_s7, [#allocation6], %s948_s9, %s948_s9, %s949_s10  }
  0x35   : > { %p39_p4 = scmp.ge.s32.totalorder %s1270_s30, 2  ;;  %p1085_p9 = por %p127_p1, %p53_p10 }
  0x36   : > { %p1089_p6 = por %p54_p2, %p53_p10  ;;  %s207_s8 = sand.u32 1, %s924_s17  }
  0x37   : > { %s1272_s30 = smov (%p39_p4, %s1270_s30), 0  ;;  %p656_p8 = scmp.lt.s32.totalorder %s944_s22, 4 }
  0x38   : > { %s577_s9 = sshll.u32 %s207_s8, 3  ;;  %s41_s10 = ssub.s32 %s940_s21, %s1272_s30 }
  0x39   : > { %s43_s11 = sor.u32 %s42_s5, %s41_s10  ;;  %s578_s12 = sshll.u32 %s940_s21, 1 }
  0x3a   : > { %p44_p11 = scmp.eq.s32.totalorder %s43_s11, 0  ;;  %s216_s13 = sadd.s32 %s936_s20, %s578_s12 }
  0x3b   : > { %s579_s14 = sshll.u32 %s216_s13, 7  ;;  %s211_s24 = scalar_lea.vmem [#allocation2], %s577_s9 }
  0x3c   : > { %s220_s1 = sshll.u32 %s211_s24, 4  ;;  %s218_s15 = scalar_lea.hbm %s1227_s0, %s579_s14  ;;  %s221_s1 = int_to_ptr.vmem [resolvable:$true] %s220_s1 }
  0x3d   : > { %s1102_s2 = scalar_select %p44_p11, %s924_s17, %s46_s6  }
  0x3e   : > { %p1111_p12 = pnand %p656_p8, %p1089_p6  ;;  %s208_s5 = scalar_lea.sflag [#allocation3], %s207_s8 }
  0x3f   : > { %s799_s10 = scalar_lea.vmem %s221_s1, 128  ;;  %s950_s6 = smov [#allocation2]  }
  0x40   : > { %p788_p0 = pneg %p1111_p12  ;;  %p800_p13 = scmp.ne.s32.totalorder %s221_s1, %s799_s10 }
  0x41   : > { %s804_s9 = sshll.u32 %s950_s6, 4  ;;  %s805_s9 = int_to_ptr.vmem [resolvable:$false] %s804_s9 }
  0x42   : > { %p802_p1 = pnand %p800_p13, %p788_p0  ;;  %s806_s27 = scalar_lea.vmem %s805_s9, 256 }
  0x43   : > { %p807_p10 = scmp.lt.s32.totalorder %s221_s1, %s805_s9  ;;  %p808_p2 = scmp.lt.s32.totalorder %s806_s27, %s799_s10 }
  0x44   : > { %p803_p5 = pneg %p802_p1 }
  0x45   : > { %p809_p4 = por %p808_p2, %p807_p10 }
  0x47   : > { %p810_p11 = pnand %p809_p4, %p803_p5 }
  0x49   : > { %813 = shalt.err (!%p810_p11)
}
  0x4a   : > { %646 = dma.hbm_to_vmem [thread:$0]  (!%p1111_p12), %s218_s15, 128, %s221_s1, %s208_s5  }
  0x4b   : > { %229 = sbr.rel (%p1042_p7) target bundleno = 325 (0x145), region = 32  ;;  %s1122_s29 = sand.u32 (!%p1042_p7), 1, %s920_s16  }
  0x4c   : > { %s581_s23 = sshll.u32 (!%p1042_p7), %s1122_s29, 3  ;;  %s232_s8 = scalar_lea.sflag (!%p1042_p7), [#allocation3], %s1122_s29 }
  0x4d   : > { %s235_s11 = scalar_lea.vmem (!%p1042_p7), [#allocation2], %s581_s23 }
  0x50   : > { %899 = dma.done.wait (%p1032_p3), %s232_s8, 128  }
  0x51   : > { %901 = vsyncadd (%p1032_p3), %s232_s8, 4294967168  ;;  %p1254_p6 = scmp.ne.s32.totalorder %s1242_s25, 0 }
  0x53   : > { %903 = dma.done.wait (%p1254_p6), [#allocation6], 512  }
  0x54   : > { %905 = vsyncadd (%p1254_p6), [#allocation6], 4294966784  ;;  %v951_v0 = vmov 0.0   ;;  %vm952_vm0 = vmmov 0   ;;  %v730_v1 = vld [vmem:[#allocation5 + $0x8] sm:$0xff]   ;;  %v731_v2 = vld [vmem:[#allocation7 + $0x8] sm:$0xff]  }
  0x55   : > { %606 = vmatprep.subr.bf16.mxu0 %v951_v0  ;;  %614 = vmatprep.subr.bf16.mxu1 %v951_v0  ;;  %v732_v3 = vld [vmem:[#allocation5] sm:$0xff]   ;;  %v733_v4 = vld [vmem:[#allocation7] sm:$0xff]   ;;  %vm292_vm1 = vcmask 261120   ;;  %s594_s1 = sshll.u32 %s932_s19, 1  ;;  %s584_s4 = sshll.u32 %s1122_s29, 2  ;;  %vm337_vm2 = vcmask 257024  }
  0x56   : > { %610 = vmatprep.mubr.msk.bf16.mxu0 %vm952_vm0, %v951_v0  ;;  %618 = vmatprep.mubr.msk.bf16.mxu1 %vm952_vm0, %v951_v0  ;;  %v274_v5 = vld [vmem:[%s235_s11] sm:$0xff]  ;;  %s414_s15 = sadd.s32 %s928_s18, %s594_s1  ;;  %s265_s26 = scalar_lea.vmem [#allocation8], %s584_s4 }
  0x57   : > { %607 = vmatpush3.bf16.msra.mxu0 %v730_v1  ;;  %615 = vmatpush3.bf16.msra.mxu1 %v731_v2  ;;  %v275_v6 = vpack.c.bf16 %v274_v5, %v274_v5  ;;  %s595_s25 = sshll.u32 %s414_s15, 6  ;;  %s418_s28 = sshll.u32 %s265_s26, 4  ;;  %s1145_s28 = int_to_ptr.vmem [resolvable:$true] %s418_s28 }
  0x58   : > { %608 = vmatprep.subr.bf16.mxu0 %v951_v0  ;;  %616 = vmatprep.subr.bf16.mxu1 %v951_v0  ;;  %s1137_s12 = scalar_lea.vmem [#allocation9], %s584_s4  ;;  %s1143_s5 = scalar_lea.hbm %s1230_s3, %s595_s25 }
  0x59   : > { %s433_s13 = sshll.u32 %s1137_s12, 4  ;;  %s1255_s10 = sld [smem:[#allocation20_spill]]  ;;  %s1152_s13 = int_to_ptr.vmem [resolvable:$true] %s433_s13 }
  0x5a   : > { %s398_s9 = scalar_lea.sflag [#allocation4], %s1122_s29  ;;  %s814_s27 = scalar_lea.vmem %s1145_s28, 64 }
  0x5b   : > { %609 = vmatpush3.bf16.msra.mxu0 %v732_v3  ;;  %617 = vmatpush3.bf16.msra.mxu1 %v733_v4  ;;  %p815_p3 = scmp.ne.s32.totalorder %s1145_s28, %s814_s27  ;;  %s953_s23 = smov [#allocation8]  }
  0x5c   : > { %s818_s8 = sshll.u32 %s953_s23, 4  ;;  %s819_s8 = int_to_ptr.vmem [resolvable:$false] %s818_s8 }
  0x5d   : > { %p816_p7 = pnand %p815_p3, %p1085_p9  ;;  %s820_s11 = scalar_lea.vmem %s819_s8, 128 }
  0x5e   : > { %611 = vmatmul.mubr.msk.bf16.vlgmr.msra.gmra.mxu0 %vm292_vm1, %v275_v6  ;;  %619 = vmatmul.mubr.msk.bf16.vlgmr.msra.gmra.mxu1 %vm292_vm1, %v275_v6  ;;  %p821_p12 = scmp.lt.s32.totalorder %s1145_s28, %s819_s8  ;;  %p822_p0 = scmp.lt.s32.totalorder %s820_s11, %s814_s27 }
  0x5f   : > { %s1150_s6 = scalar_lea.hbm %s1255_s10, %s595_s25  ;;  %p817_p8 = pneg %p816_p7 }
  0x60   : > { %p823_p13 = por %p822_p0, %p821_p12 }
  0x62   : > { %p824_p1 = pnand %p823_p13, %p817_p8 }
 0x11e   : > { %v330_v7 = vpop.f32.mrf.mxu0  ;;  %v389_v9 = vpop.f32.mrf.mxu1 }
 0x11f   : > { %v336_v8 = vpack.c.bf16 %v330_v7, %v330_v7  ;;  %v395_v10 = vpack.c.bf16 %v389_v9, %v389_v9 }
 0x120   : > { %v612_v11 = vpop.f32.mrf.mxu0  ;;  %v620_v12 = vpop.f32.mrf.mxu1 }
 0x121   : > { %338 = vst.msk [vmem:[%s265_s26] sm:$0xf] %vm337_vm2, %v336_v8 }
 0x122   : > { %v333_v13 = vpop.f32.mrf.mxu0 }
 0x123   : > { %827 = shalt.err (!%p824_p1)
}
 0x124   : > { %s828_s1 = scalar_lea.hbm %s1143_s5, 64  ;;  %s832_s25 = scalar_lea.hbm %s1230_s3, 256 }
 0x125   : > { %p829_p5 = scmp.ne.s32.totalorder %s1143_s5, %s828_s1  ;;  %p833_p4 = scmp.lt.s32.totalorder %s1143_s5, %s1230_s3 }
 0x126   : > { %p834_p11 = scmp.lt.s32.totalorder %s832_s25, %s828_s1 }
 0x127   : > { %p830_p10 = pnand %p829_p5, %p1085_p9 }
 0x128   : > { %p835_p6 = por %p834_p11, %p833_p4 }
 0x129   : > { %p831_p2 = pneg %p830_p10 }
 0x12b   : > { %p836_p3 = pnand %p835_p6, %p831_p2 }
 0x12d   : > { %839 = shalt.err (!%p836_p3)
}
 0x12e   : > { %632 = dma.vmem_to_hbm [thread:$0]  (%p1085_p9), %s1145_s28, 64, %s1143_s5, %s398_s9   ;;  %396 = vst.msk [vmem:[%s1137_s12] sm:$0xf] %vm337_vm2, %v395_v10  ;;  %v392_v14 = vpop.f32.mrf.mxu1 }
 0x12f   : > { %s403_s24 = scalar_lea.sflag [#allocation10], %s1122_s29  ;;  %s840_s18 = scalar_lea.vmem %s1152_s13, 64 }
 0x130   : > { %p841_p7 = scmp.ne.s32.totalorder %s1152_s13, %s840_s18  ;;  %s954_s19 = smov [#allocation9]  }
 0x131   : > { %s844_s27 = sshll.u32 %s954_s19, 4  ;;  %s845_s27 = int_to_ptr.vmem [resolvable:$false] %s844_s27 }
 0x132   : > { %p842_p8 = pnand %p841_p7, %p1085_p9  ;;  %s846_s23 = scalar_lea.vmem %s845_s27, 128 }
 0x133   : > { %p847_p0 = scmp.lt.s32.totalorder %s1152_s13, %s845_s27  ;;  %p848_p13 = scmp.lt.s32.totalorder %s846_s23, %s840_s18 }
 0x134   : > { %p843_p12 = pneg %p842_p8 }
 0x135   : > { %p849_p1 = por %p848_p13, %p847_p0 }
 0x137   : > { %p850_p5 = pnand %p849_p1, %p843_p12 }
 0x139   : > { %853 = shalt.err (!%p850_p5)
}
 0x13a   : > { %s854_s28 = scalar_lea.hbm %s1150_s6, 64  ;;  %s858_s5 = scalar_lea.hbm %s1255_s10, 256 }
 0x13b   : > { %p855_p10 = scmp.ne.s32.totalorder %s1150_s6, %s854_s28  ;;  %p859_p11 = scmp.lt.s32.totalorder %s1150_s6, %s1255_s10 }
 0x13c   : > { %p860_p6 = scmp.lt.s32.totalorder %s858_s5, %s854_s28 }
 0x13d   : > { %p856_p2 = pnand %p855_p10, %p1085_p9 }
 0x13e   : > { %p861_p3 = por %p860_p6, %p859_p11 }
 0x13f   : > { %p857_p4 = pneg %p856_p2 }
 0x141   : > { %p862_p7 = pnand %p861_p3, %p857_p4 }
 0x143   : > { %865 = shalt.err (!%p862_p7)
}
 0x144   : > { %633 = dma.vmem_to_hbm [thread:$0]  (%p1085_p9), %s1152_s13, 64, %s1150_s6, %s403_s24   ;;  %v613_v15 = vpop.f32.mrf.mxu0  ;;  %v621_v16 = vpop.f32.mrf.mxu1 }
 0x145 PF: > { %s1256_s11 = sld [smem:[#allocation15_spill]]  ;;  %p659_p8 = scmp.ge.s32.totalorder %s944_s22, 2 }
 0x146   : > { %s1257_s1 = sld [smem:[#allocation16_spill]] }
 0x14b   : > { %s445_s4 = sand.u32 1, %s1256_s11  }
 0x14c   : > { %p1258_p12 = scmp.ne.s32.totalorder %s1257_s1, 0  ;;  %s446_s15 = scalar_lea.sflag [#allocation4], %s445_s4 }
 0x14e   : > { %p648_p0 = pnand %p659_p8, %p1258_p12 }
 0x150   : > { %p649_p13 = pneg %p648_p0 }
 0x152   : > { %907 = dma.done.wait (%p649_p13), %s446_s15, 64  }
 0x153   : > { %909 = vsyncadd (%p649_p13), %s446_s15, 4294967232  ;;  %s455_s25 = scalar_lea.sflag [#allocation10], %s445_s4 }
 0x154   : > { %911 = dma.done.wait (%p649_p13), %s455_s25, 64  }
 0x155   : > { %913 = vsyncadd (%p649_p13), %s455_s25, 4294967232  ;;  %s25_s22 = sadd.s32 1, %s944_s22   ;;  %s1259_s7 = sld [smem:[#allocation17_spill]] }
 0x156   : > { %p22_p9 = scmp.ge.s32.totalorder %s25_s22, 6   ;;  %s1260_s15 = smov %s920_s16 }
 0x157   : > { %s1261_s16 = smov %s924_s17  ;;  %s1262_s17 = smov %s1102_s2 }
 0x158   : > { %s1263_s18 = smov %s936_s20  ;;  %s1264_s19 = smov %s940_s21 }
 0x159   : > { %s1266_s21 = smov %s1272_s30  ;;  %24 = sbr.rel (!%p22_p9) target bundleno = 14 (0xe), region = 102 }
 0x15b   : > { %s1265_s20 = smov %s1259_s7 }
 0x15e   :  { %460 = vsyncpa [#allocation3], 1 }
 0x15f   :  { %462 = vsyncpa [#allocation3 + $0x1], 1 }
 0x160   :  { %463 = vsyncpa [#allocation6], 1 }
 0x161   :  { %464 = vsyncpa [#allocation4], 1 }
 0x162   :  { %466 = vsyncpa [#allocation4 + $0x1], 1 }
 0x163   :  { %467 = vsyncpa [#allocation10], 1 }
 0x164   :  { %469 = vsyncpa [#allocation10 + $0x1], 1 }

// kernel: tpu_custom_call.1
= control target key start
LH: loop header
LB: loop body
LE: loop exit
PB: predicated region body
PF: predicated region fallthrough
CT: control target
= control target key end

     0   :  { %s1227_s0 = inlined_call_operand.hbm [shape: f32[2,16,32], index: 0, kind: input, shape index: {}]   ;;  %s1228_s1 = inlined_call_operand.hbm [shape: bf16[32,32], index: 1, kind: input, shape index: {}]   ;;  %s1229_s2 = inlined_call_operand.hbm [shape: bf16[32,32], index: 2, kind: input, shape index: {}]   ;;  %s1230_s3 = inlined_call_operand.hbm [shape: bf16[2,16,32], index: 3, kind: output, shape index: {0}]   ;;  %s1231_s4 = inlined_call_operand.hbm [shape: bf16[2,16,32], index: 4, kind: output, shape index: {1}]  }
   0x1   :  { %1238 = sst [smem:[#allocation18_spill]] %s1228_s1 }
   0x2   :  { %1239 = sst [smem:[#allocation19_spill]] %s1229_s2 }
   0x3   :  { %1240 = sst [smem:[#allocation20_spill]] %s1231_s4 }
   0x4   :  { %10 = vsyncpa [#allocation3], 0 }
   0x5   :  { %12 = vsyncpa [#allocation3 + $0x1], 0 }
   0x6   :  { %13 = vsyncpa [#allocation6], 0 }
   0x7   :  { %14 = vsyncpa [#allocation4], 0 }
   0x8   :  { %16 = vsyncpa [#allocation4 + $0x1], 0 }
   0x9   :  { %17 = vsyncpa [#allocation10], 0 }
   0xa   :  { %19 = vsyncpa [#allocation10 + $0x1], 0  ;;  %s980_s15 = smov 0   ;;  %s982_s16 = smov 0  }
   0xb   :  { %s984_s17 = smov 0   ;;  %s986_s18 = smov 0  }
   0xc   :  { %s988_s19 = smov 0   ;;  %s990_s20 = smov 0  }
   0xd   :  { %s992_s21 = smov 0   ;;  %s994_s22 = smov 0  }
   0xe LB: > { %1241 = sst [smem:[#allocation15_spill]] %s916_s15  ;;  %s571_s23 = sadd.s32 4294967295, %s944_s22   ;;  %s944_s22 = sphi %s994_s22, %s25_s22   ;;  %s940_s21 = sphi %s992_s21, %s1266_s21   ;;  %s936_s20 = sphi %s990_s20, %s1265_s20   ;;  %s932_s19 = sphi %s988_s19, %s1264_s19   ;;  %s928_s18 = sphi %s986_s18, %s1263_s18   ;;  %s924_s17 = sphi %s984_s17, %s1262_s17   ;;  %s920_s16 = sphi %s982_s16, %s1261_s16   ;;  %s916_s15 = sphi %s980_s15, %s1260_s15  }
   0xf   : > { %s572_s24 = sadd.s32 4294967294, %s944_s22   ;;  %p59_p0 = scmp.ne.s32.totalorder %s920_s16, %s916_s15 }
  0x10   : > { %p1026_p1 = scmp.eq.s32.totalorder %s571_s23, 0  ;;  %p133_p2 = scmp.eq.s32.totalorder %s572_s24, 3 }
  0x11   : > { %p573_p4 = scmp.ge.s32.totalorder %s944_s22, 1  ;;  %p168_p6 = scmp.lt.s32.totalorder %s944_s22, 5 }
  0x12   : > { %s1242_s25 = scalar_select %p1026_p1, 1, 0 }
  0x13   : > { %p1032_p3 = por %p1026_p1, %p59_p0  ;;  %p1037_p5 = por %p133_p2, %p59_p0 }
  0x14   : > { %p1042_p7 = pnand %p573_p4, %p168_p6  ;;  %s946_s29 = smov [#allocation5]  }
  0x15   : > { %s1244_s27 = scalar_select %p1037_p5, 1, 0 }
  0x16   : > { %s180_s30 = sshll.u32 %s946_s29, 4  ;;  %p636_p8 = pneg %p1042_p7  ;;  %s181_s30 = int_to_ptr.vmem [resolvable:$true] %s180_s30 }
  0x17   : > { %1245 = sst [smem:[#allocation16_spill]] %s1244_s27  ;;  %s947_s6 = smov [#allocation7]  }
  0x18   : > { %p1050_p9 = pnand %p636_p8, %p1026_p1  ;;  %s193_s7 = sshll.u32 %s947_s6, 4  ;;  %s194_s7 = int_to_ptr.vmem [resolvable:$true] %s193_s7 }
  0x19   : > { %s745_s8 = scalar_lea.vmem %s181_s30, 256  ;;  %p753_p0 = scmp.lt.s32.totalorder %s181_s30, %s181_s30 }
  0x1a   : > { %p736_p10 = pneg %p1050_p9  ;;  %p746_p11 = scmp.ne.s32.totalorder %s181_s30, %s745_s8 }
  0x1b   : > { %p754_p2 = scmp.lt.s32.totalorder %s745_s8, %s745_s8 }
  0x1c   : > { %p748_p12 = pnand %p746_p11, %p736_p10 }
  0x1d   : > { %p755_p4 = por %p754_p2, %p753_p0 }
  0x1e   : > { %p749_p13 = pneg %p748_p12 }
  0x20   : > { %p756_p6 = pnand %p755_p4, %p749_p13 }
  0x22   : > { %759 = shalt.err (!%p756_p6)
}
  0x23   : > { %s948_s9 = smov 64   ;;  %s949_s10 = smov 4  }
  0x24   : > { %s1248_s1 = sld [smem:[#allocation18_spill]]  ;;  %s771_s13 = scalar_lea.vmem %s194_s7, 256 }
  0x25   : > { %p772_p8 = scmp.ne.s32.totalorder %s194_s7, %s771_s13  ;;  %p779_p5 = scmp.lt.s32.totalorder %s194_s7, %s194_s7 }
  0x26   : > { %p780_p1 = scmp.lt.s32.totalorder %s771_s13, %s771_s13 }
  0x27   : > { %p774_p11 = pnand %p772_p8, %p736_p10 }
  0x28   : > { %p781_p0 = por %p780_p1, %p779_p5 }
  0x29   : > { %p775_p12 = pneg %p774_p11 }
  0x2a   : > { %639 = dma.hbm_to_vmem [thread:$0]  (!%p1050_p9), %s1248_s1, 256, %s181_s30, [#allocation6], %s948_s9, %s948_s9, %s949_s10  }
  0x2b   : > { %p782_p13 = pnand %p781_p0, %p775_p12 }
  0x2d   : > { %785 = shalt.err (!%p782_p13)
}
  0x2e   : > { %s1249_s2 = sld [smem:[#allocation19_spill]]  ;;  %p127_p1 = scmp.eq.s32.totalorder %s571_s23, 3 }
  0x2f   : > { %s34_s29 = sadd.s32 1, %s936_s20  ;;  %s37_s30 = sadd.s32 1, %s940_s21 }
  0x30   : > { %p35_p5 = scmp.ge.s32.totalorder %s34_s29, 2  ;;  %p53_p10 = scmp.ne.s32.totalorder %s924_s17, %s920_s16 }
  0x31   : > { %p54_p2 = scmp.eq.s32.totalorder %s944_s22, 0  ;;  %s46_s6 = sadd.s32 1, %s924_s17 }
  0x32   : > { %s1268_s29 = smov (%p35_p5, %s34_s29), 0  ;;  %s1270_s30 = smov (!%p35_p5, %s37_s30), %s940_s21 }
  0x33   : > { %1250 = sst [smem:[#allocation17_spill]] %s1268_s29  ;;  %s42_s5 = ssub.s32 %s936_s20, %s1268_s29 }
  0x34   : > { %642 = dma.hbm_to_vmem [thread:$0]  (!%p1050_p9), %s1249_s2, 256, %s194_s7, [#allocation6], %s948_s9, %s948_s9, %s949_s10  }
  0x35   : > { %p39_p4 = scmp.ge.s32.totalorder %s1270_s30, 2  ;;  %p1085_p9 = por %p127_p1, %p53_p10 }
  0x36   : > { %p1089_p6 = por %p54_p2, %p53_p10  ;;  %s207_s8 = sand.u32 1, %s924_s17  }
  0x37   : > { %s1272_s30 = smov (%p39_p4, %s1270_s30), 0  ;;  %p656_p8 = scmp.lt.s32.totalorder %s944_s22, 4 }
  0x38   : > { %s577_s9 = sshll.u32 %s207_s8, 3  ;;  %s41_s10 = ssub.s32 %s940_s21, %s1272_s30 }
  0x39   : > { %s43_s11 = sor.u32 %s42_s5, %s41_s10  ;;  %s578_s12 = sshll.u32 %s940_s21, 1 }
  0x3a   : > { %p44_p11 = scmp.eq.s32.totalorder %s43_s11, 0  ;;  %s216_s13 = sadd.s32 %s936_s20, %s578_s12 }
  0x3b   : > { %s579_s14 = sshll.u32 %s216_s13, 7  ;;  %s211_s24 = scalar_lea.vmem [#allocation2], %s577_s9 }
  0x3c   : > { %s220_s1 = sshll.u32 %s211_s24, 4  ;;  %s218_s15 = scalar_lea.hbm %s1227_s0, %s579_s14  ;;  %s221_s1 = int_to_ptr.vmem [resolvable:$true] %s220_s1 }
  0x3d   : > { %s1102_s2 = scalar_select %p44_p11, %s924_s17, %s46_s6  }
  0x3e   : > { %p1111_p12 = pnand %p656_p8, %p1089_p6  ;;  %s208_s5 = scalar_lea.sflag [#allocation3], %s207_s8 }
  0x3f   : > { %s799_s10 = scalar_lea.vmem %s221_s1, 128  ;;  %s950_s6 = smov [#allocation2]  }
  0x40   : > { %p788_p0 = pneg %p1111_p12  ;;  %p800_p13 = scmp.ne.s32.totalorder %s221_s1, %s799_s10 }
  0x41   : > { %s804_s9 = sshll.u32 %s950_s6, 4  ;;  %s805_s9 = int_to_ptr.vmem [resolvable:$false] %s804_s9 }
  0x42   : > { %p802_p1 = pnand %p800_p13, %p788_p0  ;;  %s806_s27 = scalar_lea.vmem %s805_s9, 256 }
  0x43   : > { %p807_p10 = scmp.lt.s32.totalorder %s221_s1, %s805_s9  ;;  %p808_p2 = scmp.lt.s32.totalorder %s806_s27, %s799_s10 }
  0x44   : > { %p803_p5 = pneg %p802_p1 }
  0x45   : > { %p809_p4 = por %p808_p2, %p807_p10 }
  0x47   : > { %p810_p11 = pnand %p809_p4, %p803_p5 }
  0x49   : > { %813 = shalt.err (!%p810_p11)
}
  0x4a   : > { %646 = dma.hbm_to_vmem [thread:$0]  (!%p1111_p12), %s218_s15, 128, %s221_s1, %s208_s5  }
  0x4b   : > { %229 = sbr.rel (%p1042_p7) target bundleno = 325 (0x145), region = 32  ;;  %s1122_s29 = sand.u32 (!%p1042_p7), 1, %s920_s16  }
  0x4c   : > { %s581_s23 = sshll.u32 (!%p1042_p7), %s1122_s29, 3  ;;  %s232_s8 = scalar_lea.sflag (!%p1042_p7), [#allocation3], %s1122_s29 }
  0x4d   : > { %s235_s11 = scalar_lea.vmem (!%p1042_p7), [#allocation2], %s581_s23 }
  0x50   : > { %899 = dma.done.wait (%p1032_p3), %s232_s8, 128  }
  0x51   : > { %901 = vsyncadd (%p1032_p3), %s232_s8, 4294967168  ;;  %p1254_p6 = scmp.ne.s32.totalorder %s1242_s25, 0 }
  0x53   : > { %903 = dma.done.wait (%p1254_p6), [#allocation6], 512  }
  0x54   : > { %905 = vsyncadd (%p1254_p6), [#allocation6], 4294966784  ;;  %v951_v0 = vmov 0.0   ;;  %vm952_vm0 = vmmov 0   ;;  %v730_v1 = vld [vmem:[#allocation5 + $0x8] sm:$0xff]   ;;  %v731_v2 = vld [vmem:[#allocation7 + $0x8] sm:$0xff]  }
  0x55   : > { %606 = vmatprep.subr.bf16.mxu0 %v951_v0  ;;  %614 = vmatprep.subr.bf16.mxu1 %v951_v0  ;;  %v732_v3 = vld [vmem:[#allocation5] sm:$0xff]   ;;  %v733_v4 = vld [vmem:[#allocation7] sm:$0xff]   ;;  %vm292_vm1 = vcmask 261120   ;;  %s594_s1 = sshll.u32 %s932_s19, 1  ;;  %s584_s4 = sshll.u32 %s1122_s29, 2  ;;  %vm337_vm2 = vcmask 257024  }
  0x56   : > { %610 = vmatprep.mubr.msk.bf16.mxu0 %vm952_vm0, %v951_v0  ;;  %618 = vmatprep.mubr.msk.bf16.mxu1 %vm952_vm0, %v951_v0  ;;  %v274_v5 = vld [vmem:[%s235_s11] sm:$0xff]  ;;  %s414_s15 = sadd.s32 %s928_s18, %s594_s1  ;;  %s265_s26 = scalar_lea.vmem [#allocation8], %s584_s4 }
  0x57   : > { %607 = vmatpush3.bf16.msra.mxu0 %v730_v1  ;;  %615 = vmatpush3.bf16.msra.mxu1 %v731_v2  ;;  %v275_v6 = vpack.c.bf16 %v274_v5, %v274_v5  ;;  %s595_s25 = sshll.u32 %s414_s15, 6  ;;  %s418_s28 = sshll.u32 %s265_s26, 4  ;;  %s1145_s28 = int_to_ptr.vmem [resolvable:$true] %s418_s28 }
  0x58   : > { %608 = vmatprep.subr.bf16.mxu0 %v951_v0  ;;  %616 = vmatprep.subr.bf16.mxu1 %v951_v0  ;;  %s1137_s12 = scalar_lea.vmem [#allocation9], %s584_s4  ;;  %s1143_s5 = scalar_lea.hbm %s1230_s3, %s595_s25 }
  0x59   : > { %s433_s13 = sshll.u32 %s1137_s12, 4  ;;  %s1255_s10 = sld [smem:[#allocation20_spill]]  ;;  %s1152_s13 = int_to_ptr.vmem [resolvable:$true] %s433_s13 }
  0x5a   : > { %s398_s9 = scalar_lea.sflag [#allocation4], %s1122_s29  ;;  %s814_s27 = scalar_lea.vmem %s1145_s28, 64 }
  0x5b   : > { %609 = vmatpush3.bf16.msra.mxu0 %v732_v3  ;;  %617 = vmatpush3.bf16.msra.mxu1 %v733_v4  ;;  %p815_p3 = scmp.ne.s32.totalorder %s1145_s28, %s814_s27  ;;  %s953_s23 = smov [#allocation8]  }
  0x5c   : > { %s818_s8 = sshll.u32 %s953_s23, 4  ;;  %s819_s8 = int_to_ptr.vmem [resolvable:$false] %s818_s8 }
  0x5d   : > { %p816_p7 = pnand %p815_p3, %p1085_p9  ;;  %s820_s11 = scalar_lea.vmem %s819_s8, 128 }
  0x5e   : > { %611 = vmatmul.mubr.msk.bf16.vlgmr.msra.gmra.mxu0 %vm292_vm1, %v275_v6  ;;  %619 = vmatmul.mubr.msk.bf16.vlgmr.msra.gmra.mxu1 %vm292_vm1, %v275_v6  ;;  %p821_p12 = scmp.lt.s32.totalorder %s1145_s28, %s819_s8  ;;  %p822_p0 = scmp.lt.s32.totalorder %s820_s11, %s814_s27 }
  0x5f   : > { %s1150_s6 = scalar_lea.hbm %s1255_s10, %s595_s25  ;;  %p817_p8 = pneg %p816_p7 }
  0x60   : > { %p823_p13 = por %p822_p0, %p821_p12 }
  0x62   : > { %p824_p1 = pnand %p823_p13, %p817_p8 }
 0x11e   : > { %v330_v7 = vpop.f32.mrf.mxu0  ;;  %v389_v9 = vpop.f32.mrf.mxu1 }
 0x11f   : > { %v336_v8 = vpack.c.bf16 %v330_v7, %v330_v7  ;;  %v395_v10 = vpack.c.bf16 %v389_v9, %v389_v9 }
 0x120   : > { %v612_v11 = vpop.f32.mrf.mxu0  ;;  %v620_v12 = vpop.f32.mrf.mxu1 }
 0x121   : > { %338 = vst.msk [vmem:[%s265_s26] sm:$0xf] %vm337_vm2, %v336_v8 }
 0x122   : > { %v333_v13 = vpop.f32.mrf.mxu0 }
 0x123   : > { %827 = shalt.err (!%p824_p1)
}
 0x124   : > { %s828_s1 = scalar_lea.hbm %s1143_s5, 64  ;;  %s832_s25 = scalar_lea.hbm %s1230_s3, 256 }
 0x125   : > { %p829_p5 = scmp.ne.s32.totalorder %s1143_s5, %s828_s1  ;;  %p833_p4 = scmp.lt.s32.totalorder %s1143_s5, %s1230_s3 }
 0x126   : > { %p834_p11 = scmp.lt.s32.totalorder %s832_s25, %s828_s1 }
 0x127   : > { %p830_p10 = pnand %p829_p5, %p1085_p9 }
 0x128   : > { %p835_p6 = por %p834_p11, %p833_p4 }
 0x129   : > { %p831_p2 = pneg %p830_p10 }
 0x12b   : > { %p836_p3 = pnand %p835_p6, %p831_p2 }
 0x12d   : > { %839 = shalt.err (!%p836_p3)
}
 0x12e   : > { %632 = dma.vmem_to_hbm [thread:$0]  (%p1085_p9), %s1145_s28, 64, %s1143_s5, %s398_s9   ;;  %396 = vst.msk [vmem:[%s1137_s12] sm:$0xf] %vm337_vm2, %v395_v10  ;;  %v392_v14 = vpop.f32.mrf.mxu1 }
 0x12f   : > { %s403_s24 = scalar_lea.sflag [#allocation10], %s1122_s29  ;;  %s840_s18 = scalar_lea.vmem %s1152_s13, 64 }
 0x130   : > { %p841_p7 = scmp.ne.s32.totalorder %s1152_s13, %s840_s18  ;;  %s954_s19 = smov [#allocation9]  }
 0x131   : > { %s844_s27 = sshll.u32 %s954_s19, 4  ;;  %s845_s27 = int_to_ptr.vmem [resolvable:$false] %s844_s27 }
 0x132   : > { %p842_p8 = pnand %p841_p7, %p1085_p9  ;;  %s846_s23 = scalar_lea.vmem %s845_s27, 128 }
 0x133   : > { %p847_p0 = scmp.lt.s32.totalorder %s1152_s13, %s845_s27  ;;  %p848_p13 = scmp.lt.s32.totalorder %s846_s23, %s840_s18 }
 0x134   : > { %p843_p12 = pneg %p842_p8 }
 0x135   : > { %p849_p1 = por %p848_p13, %p847_p0 }
 0x137   : > { %p850_p5 = pnand %p849_p1, %p843_p12 }
 0x139   : > { %853 = shalt.err (!%p850_p5)
}
 0x13a   : > { %s854_s28 = scalar_lea.hbm %s1150_s6, 64  ;;  %s858_s5 = scalar_lea.hbm %s1255_s10, 256 }
 0x13b   : > { %p855_p10 = scmp.ne.s32.totalorder %s1150_s6, %s854_s28  ;;  %p859_p11 = scmp.lt.s32.totalorder %s1150_s6, %s1255_s10 }
 0x13c   : > { %p860_p6 = scmp.lt.s32.totalorder %s858_s5, %s854_s28 }
 0x13d   : > { %p856_p2 = pnand %p855_p10, %p1085_p9 }
 0x13e   : > { %p861_p3 = por %p860_p6, %p859_p11 }
 0x13f   : > { %p857_p4 = pneg %p856_p2 }
 0x141   : > { %p862_p7 = pnand %p861_p3, %p857_p4 }
 0x143   : > { %865 = shalt.err (!%p862_p7)
}
 0x144   : > { %633 = dma.vmem_to_hbm [thread:$0]  (%p1085_p9), %s1152_s13, 64, %s1150_s6, %s403_s24   ;;  %v613_v15 = vpop.f32.mrf.mxu0  ;;  %v621_v16 = vpop.f32.mrf.mxu1 }
 0x145 PF: > { %s1256_s11 = sld [smem:[#allocation15_spill]]  ;;  %p659_p8 = scmp.ge.s32.totalorder %s944_s22, 2 }
 0x146   : > { %s1257_s1 = sld [smem:[#allocation16_spill]] }
 0x14b   : > { %s445_s4 = sand.u32 1, %s1256_s11  }
 0x14c   : > { %p1258_p12 = scmp.ne.s32.totalorder %s1257_s1, 0  ;;  %s446_s15 = scalar_lea.sflag [#allocation4], %s445_s4 }
 0x14e   : > { %p648_p0 = pnand %p659_p8, %p1258_p12 }
 0x150   : > { %p649_p13 = pneg %p648_p0 }
 0x152   : > { %907 = dma.done.wait (%p649_p13), %s446_s15, 64  }
 0x153   : > { %909 = vsyncadd (%p649_p13), %s446_s15, 4294967232  ;;  %s455_s25 = scalar_lea.sflag [#allocation10], %s445_s4 }
 0x154   : > { %911 = dma.done.wait (%p649_p13), %s455_s25, 64  }
 0x155   : > { %913 = vsyncadd (%p649_p13), %s455_s25, 4294967232  ;;  %s25_s22 = sadd.s32 1, %s944_s22   ;;  %s1259_s7 = sld [smem:[#allocation17_spill]] }
 0x156   : > { %p22_p9 = scmp.ge.s32.totalorder %s25_s22, 6   ;;  %s1260_s15 = smov %s920_s16 }
 0x157   : > { %s1261_s16 = smov %s924_s17  ;;  %s1262_s17 = smov %s1102_s2 }
 0x158   : > { %s1263_s18 = smov %s936_s20  ;;  %s1264_s19 = smov %s940_s21 }
 0x159   : > { %s1266_s21 = smov %s1272_s30  ;;  %24 = sbr.rel (!%p22_p9) target bundleno = 14 (0xe), region = 102 }
 0x15b   : > { %s1265_s20 = smov %s1259_s7 }
 0x15e   :  { %460 = vsyncpa [#allocation3], 1 }
 0x15f   :  { %462 = vsyncpa [#allocation3 + $0x1], 1 }
 0x160   :  { %463 = vsyncpa [#allocation6], 1 }
 0x161   :  { %464 = vsyncpa [#allocation4], 1 }
 0x162   :  { %466 = vsyncpa [#allocation4 + $0x1], 1 }
 0x163   :  { %467 = vsyncpa [#allocation10], 1 }
 0x164   :  { %469 = vsyncpa [#allocation10 + $0x1], 1 }

</bundles_post_ra>
